<compile_context>
chip_gen: v5e
topology: v5e:2x2
jax: 0.10.0
libtpu: 0.0.40
codegen_flags: <defaults>
</compile_context>

<pallas_src>
import functools
import math

import jax
import jax.numpy as jnp
from jax import lax
from jax.experimental import pallas as pl
from jax.experimental.pallas import tpu as pltpu

_LANE = 128
_SUBLANE = 8
_CHUNK = 512   # in-kernel batch sub-tile: h1/h2 stay at ~64 f32 vregs per stage


def _round_up(n, m):
    return (n + m - 1) // m * m


def _irm_kernel(x_ref, w1_ref, b1_ref, w2_ref, b2_ref, w3_ref, b3_ref, o_ref,
                *, chunk_b, use_bf16):
    block_b = x_ref.shape[0]
    n_chunks = block_b // chunk_b

    # Grid-resident weights/biases: already bf16 (if use_bf16), loaded once per
    # grid step and reused by every chunk -- no per-step VPU casts.
    w1 = w1_ref[...]
    w2 = w2_ref[...]
    b1 = b1_ref[...]          # (1, Hp) f32
    b2 = b2_ref[...]          # (1, Hp) f32
    w3 = w3_ref[...]          # (1, Hp) f32
    b3 = b3_ref[...]          # (1, 1)  f32

    def compute_chunk(start):
        x = x_ref[pl.ds(start, chunk_b), :]
        if use_bf16:
            x = x.astype(jnp.bfloat16)

        # Layer 1: MXU matmul (bf16 operands, f32 accumulate) + bias + ReLU (f32 VPU).
        h1 = jnp.dot(x, w1, preferred_element_type=jnp.float32)
        h1 = jnp.maximum(h1 + b1, 0.0)
        if use_bf16:
            h1 = h1.astype(jnp.bfloat16)

        # Layer 2: MXU matmul + bias + ReLU.
        h2 = jnp.dot(h1, w2, preferred_element_type=jnp.float32)
        h2 = jnp.maximum(h2 + b2, 0.0)

        # Layer 3 (out_features == 1): contract Hp via a transposed-RHS matmul
        # (w3 . h2^T) so the result is a lane-dense (1, chunk_b) row -> unmasked
        # vst stores and a contiguous HBM writeback.
        out_row = lax.dot_general(
            w3, h2, (((1,), (1,)), ((), ())),
            preferred_element_type=jnp.float32) + b3
        o_ref[:, pl.ds(start, chunk_b)] = out_row.astype(o_ref.dtype)

    if n_chunks == 1:
        compute_chunk(0)
    else:
        def body(c, carry):
            compute_chunk(pl.multiple_of(c * chunk_b, chunk_b))
            return carry
        lax.fori_loop(0, n_chunks, body, None, unroll=min(n_chunks, 8))


def _choose_block(B, requested):
    """Pick (block_b, chunk_b): block_b multiple of 8, and either a multiple of
    128 (lane-aligned output tiles) or equal to the padded batch (grid == 1)."""
    Bpad = _round_up(B, _SUBLANE)
    b = 8192 if requested is None else int(requested)
    b = max(_SUBLANE, min(b, Bpad))
    # v7x has 2 TensorCores; "parallel" only pays off if the grid has >= 2 steps.
    if b >= Bpad and B >= 2 * _LANE:
        b = -(-B // 2)
    if b >= _CHUNK:
        b = _round_up(b, _CHUNK)
        chunk = _CHUNK
    elif Bpad <= _LANE:
        b = Bpad                      # tiny batch: single full block
        chunk = b
    else:
        b = _round_up(max(b, _LANE), _LANE)
        chunk = b
    return b, chunk


def _vmem_capacity_bytes():
    try:
        return int(pltpu.get_tpu_info().vmem_capacity_bytes)
    except Exception:
        return 64 << 20   # v7x per-TensorCore VMEM; most conservative generation


def _vmem_limit_bytes(block_b, D, Hp, chunk_b, use_bf16):
    f32, bf16 = 4, 2
    wdt = bf16 if use_bf16 else f32
    lane = lambda n: _round_up(n, _LANE)
    sub = lambda n: _round_up(n, _SUBLANE)
    # Double-buffered pipelined tiles ((8,128)-padded VMEM layout).
    x_buf = sub(block_b) * lane(D) * f32
    out_buf = _SUBLANE * lane(block_b) * f32
    # Grid-resident weights (counted twice in case Pallas double-buffers them).
    weights = ((sub(D) * lane(Hp) + sub(Hp) * lane(Hp)) * wdt
               + (3 * _SUBLANE * lane(Hp) + _SUBLANE * _LANE) * f32)
    # Per-chunk live intermediates (x bf16 copy, h1 f32+bf16, h2 f32, out row).
    chunk = (chunk_b * (lane(D) * (f32 + bf16) + lane(Hp) * (2 * f32 + bf16))
             + _SUBLANE * lane(chunk_b) * f32)
    est = 2 * (x_buf + out_buf) + 2 * weights + 4 * chunk + (2 << 20)
    cap = _vmem_capacity_bytes()
    return int(min(max(2 * est, est + (4 << 20)), 0.8 * cap))


def irm_net_forward(x, w1, b1, w2, b2, w3, b3, *, block_b=None, use_bf16=True):
    """Fused forward pass of IRMNet.

    x : (B, D) float32
    w1: (D, H), b1: (1, H)
    w2: (H, H), b2: (1, H)
    w3: (H, 1), b3: (1, 1)
    returns (B, 1) float32
    """
    B, D = x.shape
    H = w1.shape[1]

    # Zero-pad the hidden dim to the 128-lane width: padded hidden units are
    # ReLU(0 + 0) = 0 and their outgoing weights are 0, so results are
    # unchanged while vregs / MXU tiles become lane-dense.  D stays unpadded.
    Hp = _round_up(H, _LANE)
    if Hp != H:
        ph = Hp - H
        w1 = jnp.pad(w1, ((0, 0), (0, ph)))
        b1 = jnp.pad(b1, ((0, 0), (0, ph)))
        w2 = jnp.pad(w2, ((0, ph), (0, ph)))
        b2 = jnp.pad(b2, ((0, 0), (0, ph)))
        w3 = jnp.pad(w3, ((0, ph), (0, 0)))
    w3_row = w3.reshape(1, Hp)   # layer-3 weights as a lane vector (f32)

    if use_bf16:
        # Pre-cast the grid-resident matmul weights once (no per-step casts,
        # half the weight HBM/VMEM).  Biases and w3/b3 stay f32.
        w1 = w1.astype(jnp.bfloat16)
        w2 = w2.astype(jnp.bfloat16)

    blk, chunk = _choose_block(B, block_b)
    Bp = _round_up(B, blk)
    x_in = jnp.pad(x, ((0, Bp - B), (0, 0))) if Bp != B else x
    grid = (Bp // blk,)

    # Advisory cost: use the real hidden size H, not the lane-padded Hp.
    flops = 2 * B * (D * H + H * H + H) + 4 * B * H
    bytes_accessed = B * (D + 1) * 4 + (D * H + H * H + 3 * H + 1) * 4
    cost = pl.CostEstimate(flops=int(flops), transcendentals=0,
                           bytes_accessed=int(bytes_accessed))

    resident = lambda shape: pl.BlockSpec(shape, lambda i: (0, 0))
    kernel = functools.partial(_irm_kernel, chunk_b=chunk, use_bf16=use_bf16)

    out = pl.pallas_call(
        kernel,
        out_shape=jax.ShapeDtypeStruct((1, Bp), jnp.float32),
        grid=grid,
        in_specs=[
            pl.BlockSpec((blk, D), lambda i: (i, 0)),        # x: batch-tiled
            resident(w1.shape), resident(b1.shape),          # resident weights
            resident(w2.shape), resident(b2.shape),
            resident(w3_row.shape), resident(b3.shape),
        ],
        out_specs=pl.BlockSpec((1, blk), lambda i: (0, i)),  # lane-dense rows
        compiler_params=pltpu.CompilerParams(
            dimension_semantics=("parallel",),
            vmem_limit_bytes=_vmem_limit_bytes(blk, D, Hp, chunk, use_bf16),
        ),
        cost_estimate=cost,
    )(x_in, w1, b1, w2, b2, w3_row, b3)

    return out.reshape(-1)[:B].reshape(B, 1)


def xavier_uniform(key, fan_in, fan_out, dtype=jnp.float32):
    # Matches torch.nn.init.xavier_uniform_ (gain=1); symmetric in fan_in/out.
    limit = math.sqrt(6.0 / (fan_in + fan_out))
    return jax.random.uniform(key, (fan_in, fan_out), dtype, -limit, limit)


def make_params(key, input_dim, inner_layer_size):
    k1, k2, k3 = jax.random.split(key, 3)
    w1 = xavier_uniform(k1, input_dim, inner_layer_size)
    b1 = jnp.zeros((1, inner_layer_size), jnp.float32)
    w2 = xavier_uniform(k2, inner_layer_size, inner_layer_size)
    b2 = jnp.zeros((1, inner_layer_size), jnp.float32)
    w3 = xavier_uniform(k3, inner_layer_size, 1)
    b3 = jnp.zeros((1, 1), jnp.float32)
    return w1, b1, w2, b2, w3, b3


def reference_forward(x, w1, b1, w2, b2, w3, b3):
    h1 = jnp.maximum(x @ w1 + b1, 0.0)
    h2 = jnp.maximum(h1 @ w2 + b2, 0.0)
    return h2 @ w3 + b3


def reference_forward_bf16(x, w1, b1, w2, b2, w3, b3):
    # Same math as the kernel (bf16 MXU operands, f32 accumulation).
    bf = jnp.bfloat16
    h1 = jnp.maximum(
        jnp.dot(x.astype(bf), w1.astype(bf),
                preferred_element_type=jnp.float32) + b1, 0.0)
    h2 = jnp.maximum(
        jnp.dot(h1.astype(bf), w2.astype(bf),
                preferred_element_type=jnp.float32) + b2, 0.0)
    return jnp.sum(h2 * w3.reshape(1, -1), axis=-1, keepdims=True) + b3


if __name__ == "__main__":
    key = jax.random.PRNGKey(0)
    kx, kp, kx2 = jax.random.split(key, 3)

    # Small shapes consistent with IRMNet(input_dim=16, inner_layer_size=32).
    batch, input_dim, inner_layer_size = 8, 16, 32
    x = jax.random.normal(kx, (batch, input_dim), jnp.float32)
    params = make_params(kp, input_dim, inner_layer_size)

    out = jax.block_until_ready(irm_net_forward(x, *params))
    ref_bf16 = reference_forward_bf16(x, *params)
    ref_f32 = reference_forward(x, *params)

    assert out.shape == (batch, 1)
    # Matches the kernel's bf16-operand / f32-accumulate math tightly ...
    assert jnp.allclose(out, ref_bf16, atol=1e-3, rtol=1e-3)
    # ... and the pure-f32 PyTorch-equivalent forward within bf16 tolerance.
    assert jnp.allclose(out, ref_f32, atol=5e-2, rtol=5e-2)

    # Exercise the multi-block (megacore-split) + in-kernel chunked path.
    batch2 = 4096
    x2 = jax.random.normal(kx2, (batch2, input_dim), jnp.float32)
    out2 = jax.block_until_ready(irm_net_forward(x2, *params))
    ref2 = reference_forward_bf16(x2, *params)
    assert out2.shape == (batch2, 1)
    assert jnp.allclose(out2, ref2, atol=2e-2, rtol=2e-2)

    print("KERNEL_OK")
</pallas_src>

<mosaic_0001>
module attributes {stable_mosaic.version = 11 : i64} {
  func.func @_irm_kernel(%arg0: i32, %arg1: memref<8x16xf32, #tpu.memory_space<vmem>>, %arg2: memref<16x128xbf16, #tpu.memory_space<vmem>>, %arg3: memref<1x128xf32, #tpu.memory_space<vmem>>, %arg4: memref<128x128xbf16, #tpu.memory_space<vmem>>, %arg5: memref<1x128xf32, #tpu.memory_space<vmem>>, %arg6: memref<1x128xf32, #tpu.memory_space<vmem>>, %arg7: memref<1x1xf32, #tpu.memory_space<vmem>>, %arg8: memref<1x8xf32, #tpu.memory_space<vmem>>) attributes {dimension_semantics = [#tpu.dimension_semantics<parallel>], iteration_bounds = array<i64: 1>, scalar_prefetch = 0 : i64, scratch_operands = 0 : i64, tpu.core_type = #tpu.core_type<tc>, window_params = [{transform_indices = @transform_0, window_bounds = array<i64: 8, 16>}, {pipeline_mode = #tpu.pipeline_mode<synchronous>, transform_indices = @transform_1, window_bounds = array<i64: 16, 128>}, {pipeline_mode = #tpu.pipeline_mode<synchronous>, transform_indices = @transform_2, window_bounds = array<i64: 1, 128>}, {pipeline_mode = #tpu.pipeline_mode<synchronous>, transform_indices = @transform_3, window_bounds = array<i64: 128, 128>}, {pipeline_mode = #tpu.pipeline_mode<synchronous>, transform_indices = @transform_4, window_bounds = array<i64: 1, 128>}, {pipeline_mode = #tpu.pipeline_mode<synchronous>, transform_indices = @transform_5, window_bounds = array<i64: 1, 128>}, {pipeline_mode = #tpu.pipeline_mode<synchronous>, transform_indices = @transform_6, window_bounds = array<i64: 1, 1>}, {transform_indices = @transform_7, window_bounds = array<i64: 1, 8>}]} {
    %c0 = arith.constant 0 : index
    %c0_0 = arith.constant 0 : index
    %0 = vector.load %arg2[%c0, %c0_0] : memref<16x128xbf16, #tpu.memory_space<vmem>>, vector<16x128xbf16>
    %c0_1 = arith.constant 0 : index
    %c0_2 = arith.constant 0 : index
    %1 = vector.load %arg4[%c0_1, %c0_2] : memref<128x128xbf16, #tpu.memory_space<vmem>>, vector<128x128xbf16>
    %c0_3 = arith.constant 0 : index
    %c0_4 = arith.constant 0 : index
    %2 = vector.load %arg3[%c0_3, %c0_4] : memref<1x128xf32, #tpu.memory_space<vmem>>, vector<1x128xf32>
    %c0_5 = arith.constant 0 : index
    %c0_6 = arith.constant 0 : index
    %3 = vector.load %arg5[%c0_5, %c0_6] : memref<1x128xf32, #tpu.memory_space<vmem>>, vector<1x128xf32>
    %c0_7 = arith.constant 0 : index
    %c0_8 = arith.constant 0 : index
    %4 = vector.load %arg6[%c0_7, %c0_8] : memref<1x128xf32, #tpu.memory_space<vmem>>, vector<1x128xf32>
    %c0_9 = arith.constant 0 : index
    %c0_10 = arith.constant 0 : index
    %5 = vector.load %arg7[%c0_9, %c0_10] : memref<1x1xf32, #tpu.memory_space<vmem>>, vector<1x1xf32>
    %c0_11 = arith.constant 0 : index
    %c0_12 = arith.constant 0 : index
    %6 = vector.load %arg1[%c0_11, %c0_12] : memref<8x16xf32, #tpu.memory_space<vmem>>, vector<8x16xf32>
    %7 = arith.truncf %6 : vector<8x16xf32> to vector<8x16xbf16>
    %cst = arith.constant dense<0.000000e+00> : vector<8x128xf32>
    %8 = tpu.matmul %7, %0, %cst {dimension_numbers = #tpu.dot_dimension_numbers<[1], [0], [0], [1], [0, 0, 1, 1], [], []>} : vector<8x16xbf16>, vector<16x128xbf16>, vector<8x128xf32> -> vector<8x128xf32>
    %9 = vector.broadcast %2 : vector<1x128xf32> to vector<8x128xf32>
    %10 = arith.addf %8, %9 : vector<8x128xf32>
    %cst_13 = arith.constant 0.000000e+00 : f32
    %11 = vector.broadcast %cst_13 : f32 to vector<8x128xf32>
    %12 = arith.maximumf %10, %11 : vector<8x128xf32>
    %13 = arith.truncf %12 : vector<8x128xf32> to vector<8x128xbf16>
    %cst_14 = arith.constant dense<0.000000e+00> : vector<8x128xf32>
    %14 = tpu.matmul %13, %1, %cst_14 {dimension_numbers = #tpu.dot_dimension_numbers<[1], [0], [0], [1], [0, 0, 1, 1], [], []>} : vector<8x128xbf16>, vector<128x128xbf16>, vector<8x128xf32> -> vector<8x128xf32>
    %15 = vector.broadcast %3 : vector<1x128xf32> to vector<8x128xf32>
    %16 = arith.addf %14, %15 : vector<8x128xf32>
    %cst_15 = arith.constant 0.000000e+00 : f32
    %17 = vector.broadcast %cst_15 : f32 to vector<8x128xf32>
    %18 = arith.maximumf %16, %17 : vector<8x128xf32>
    %cst_16 = arith.constant dense<0.000000e+00> : vector<1x8xf32>
    %19 = tpu.matmul %4, %18, %cst_16 {dimension_numbers = #tpu.dot_dimension_numbers<[1], [1], [0], [0], [0, 0, 1, 0], [], []>} : vector<1x128xf32>, vector<8x128xf32>, vector<1x8xf32> -> vector<1x8xf32>
    %20 = vector.broadcast %5 : vector<1x1xf32> to vector<1x8xf32>
    %21 = arith.addf %19, %20 : vector<1x8xf32>
    %c0_17 = arith.constant 0 : index
    %c0_18 = arith.constant 0 : index
    %22 = vector.load %arg8[%c0_17, %c0_18] : memref<1x8xf32, #tpu.memory_space<vmem>>, vector<1x8xf32>
    tpu.vector_store %arg8[%c0_17, %c0_18], %21 {strides = array<i32>} : memref<1x8xf32, #tpu.memory_space<vmem>>, vector<1x8xf32>,
    return
  }
  func.func @transform_0(%arg0: i32) -> (i32, i32) {
    %c0_i32 = arith.constant 0 : i32
    %c0_i32_0 = arith.constant 0 : i32
    return %arg0, %c0_i32 : i32, i32
  }
  func.func @transform_1(%arg0: i32) -> (i32, i32) {
    %c0_i32 = arith.constant 0 : i32
    %c0_i32_0 = arith.constant 0 : i32
    %c0_i32_1 = arith.constant 0 : i32
    return %c0_i32, %c0_i32_0 : i32, i32
  }
  func.func @transform_2(%arg0: i32) -> (i32, i32) {
    %c0_i32 = arith.constant 0 : i32
    %c0_i32_0 = arith.constant 0 : i32
    %c0_i32_1 = arith.constant 0 : i32
    return %c0_i32, %c0_i32_0 : i32, i32
  }
  func.func @transform_3(%arg0: i32) -> (i32, i32) {
    %c0_i32 = arith.constant 0 : i32
    %c0_i32_0 = arith.constant 0 : i32
    %c0_i32_1 = arith.constant 0 : i32
    return %c0_i32, %c0_i32_0 : i32, i32
  }
  func.func @transform_4(%arg0: i32) -> (i32, i32) {
    %c0_i32 = arith.constant 0 : i32
    %c0_i32_0 = arith.constant 0 : i32
    %c0_i32_1 = arith.constant 0 : i32
    return %c0_i32, %c0_i32_0 : i32, i32
  }
  func.func @transform_5(%arg0: i32) -> (i32, i32) {
    %c0_i32 = arith.constant 0 : i32
    %c0_i32_0 = arith.constant 0 : i32
    %c0_i32_1 = arith.constant 0 : i32
    return %c0_i32, %c0_i32_0 : i32, i32
  }
  func.func @transform_6(%arg0: i32) -> (i32, i32) {
    %c0_i32 = arith.constant 0 : i32
    %c0_i32_0 = arith.constant 0 : i32
    %c0_i32_1 = arith.constant 0 : i32
    return %c0_i32, %c0_i32_0 : i32, i32
  }
  func.func @transform_7(%arg0: i32) -> (i32, i32) {
    %c0_i32 = arith.constant 0 : i32
    %c0_i32_0 = arith.constant 0 : i32
    return %c0_i32, %arg0 : i32, i32
  }
}

</mosaic_0001>

<bundles_post_ra>
// kernel: tpu_custom_call.1
= control target key start
LH: loop header
LB: loop body
LE: loop exit
PB: predicated region body
PF: predicated region fallthrough
CT: control target
= control target key end

     0   :  { %s467_s0 = inlined_call_operand.hbm [shape: f32[8,16], index: 0, kind: input, shape index: {}]   ;;  %s468_s1 = inlined_call_operand.hbm [shape: bf16[16,128], index: 1, kind: input, shape index: {}]   ;;  %s469_s2 = inlined_call_operand.vmem [shape: f32[1,128], index: 2, kind: input, shape index: {}]   ;;  %s470_s3 = inlined_call_operand.hbm [shape: bf16[128,128], index: 3, kind: input, shape index: {}]   ;;  %s471_s4 = inlined_call_operand.vmem [shape: f32[1,128], index: 4, kind: input, shape index: {}]   ;;  %s472_s5 = inlined_call_operand.vmem [shape: f32[1,128], index: 5, kind: input, shape index: {}]   ;;  %s473_s6 = inlined_call_operand.<no memory space> [shape: f32[1,1], index: 6, kind: input, shape index: {}]   ;;  %s474_s7 = inlined_call_operand.hbm [shape: f32[1,8], index: 7, kind: output, shape index: {}]  }
   0x1   :  { %v12_v0 = vstv %s473_s6 }
   0x2   :  { %13 = vst [vmem:[#allocation2] sm:$0x1] %v12_v0 }
   0x3   :  { %14 = vsyncpa [#allocation4], 0 }
   0x4   :  { %15 = vsyncpa [#allocation7], 0  ;;  %s32_s28 = sshll.u32 %s468_s1, 4  ;;  %s33_s28 = int_to_ptr.hbm [resolvable:$true] %s32_s28 }
   0x5   :  { %16 = vsyncpa [#allocation5], 0  ;;  %s396_s29 = smov [#allocation6]   ;;  %s22_s10 = sshll.u32 %s467_s0, 4  ;;  %s23_s10 = int_to_ptr.hbm [resolvable:$true] %s22_s10 }
   0x6   :  { %s34_s30 = sshll.u32 %s396_s29, 4  ;;  %s397_s11 = smov 64   ;;  %s35_s30 = int_to_ptr.vmem [resolvable:$true] %s34_s30 }
   0x7   :  { %s398_s12 = smov 4   ;;  %s399_s6 = smov [#allocation3]  }
   0x8   :  { %40 = dma.hbm_to_vmem [thread:$0]  %s33_s28, 128, %s35_s30, [#allocation7], %s397_s11, %s397_s11, %s398_s12  }
   0x9   :  { %s24_s13 = sshll.u32 %s399_s6, 4  ;;  %s47_s16 = sshll.u32 %s470_s3, 4  ;;  %s25_s13 = int_to_ptr.vmem [resolvable:$true] %s24_s13  ;;  %s48_s16 = int_to_ptr.hbm [resolvable:$true] %s47_s16 }
   0xa   :  { %27 = dma.hbm_to_vmem [thread:$0]  %s23_s10, 128, %s25_s13, [#allocation4]  }
   0xb   :  { %s400_s1 = smov [#allocation8]  }
   0xc   :  { %s49_s17 = sshll.u32 %s400_s1, 4  ;;  %s50_s17 = int_to_ptr.vmem [resolvable:$true] %s49_s17 }
   0xd   :  { %55 = dma.hbm_to_vmem [thread:$0]  %s48_s16, 1024, %s50_s17, [#allocation7], %s397_s11, %s397_s11, %s398_s12  }
   0xe   :  { %390 = dma.done.wait [#allocation4], 128  }
   0xf   :  { %391 = vsyncadd [#allocation4], 4294967168 }
  0x10   :  { %392 = dma.done.wait [#allocation7], 1152  }
  0x11   :  { %393 = vsyncadd [#allocation7], 4294966144  ;;  %v275_v1 = vld [vmem:[#allocation6] sm:$0xff]  ;;  %v97_v2 = vld [vmem:[#allocation3] sm:$0xff]  ;;  %vm108_vm0 = vcmask 130048   ;;  %v401_v19 = vmov 0  }
  0x12   :  { %v283_v3 = vld [vmem:[#allocation8 + $0x38] sm:$0xff]  ;;  %v98_v4 = vpack.c.bf16 %v97_v2, %v97_v2  ;;  %119 = vmatpush.bf16.msra.mxu0 %v275_v1  ;;  %v282_v5 = vld [vmem:[#allocation8 + $0x30] sm:$0xff]  ;;  %v281_v6 = vld [vmem:[#allocation8 + $0x28] sm:$0xff]  ;;  %291 = vset.pattern.permute.xlu0 %v401_v19  ;;  %s402_s21 = smov [#allocation9]   ;;  %s227_s25 = sshll.u32 %s474_s7, 4  ;;  %vm218_vm1 = vcmask 57344   ;;  %s228_s25 = int_to_ptr.hbm [resolvable:$true] %s227_s25 }
  0x13   :  { %178 = vmatpush.bf16.msra.mxu1 %v283_v3  ;;  %v280_v7 = vld [vmem:[#allocation8 + $0x20] sm:$0xff]  ;;  %v279_v8 = vld [vmem:[#allocation8 + $0x18] sm:$0xff]  ;;  %v278_v9 = vld [vmem:[#allocation8 + $0x10] sm:$0xff]  ;;  %s225_s22 = sshll.u32 %s402_s21, 4  ;;  %s226_s22 = int_to_ptr.vmem [resolvable:$true] %s225_s22 }
  0x14   :  { %v277_v10 = vld [vmem:[#allocation8 + $0x8] sm:$0xff]  ;;  %v276_v11 = vld [vmem:[#allocation8] sm:$0xff] }
  0x15   :  { %242 = vmatmul.msk.bf16.vlgmr.msra.gmra.mxu0 %vm108_vm0, %v98_v4  ;;  %v292_v12 = vld [vmem:[%s469_s2] ss:$0 sm:$0xff] }
  0x16   :  { %v96_v18 = vld [vmem:[#allocation2] sm:$0x1] }
  0x17   :  { %179 = vmatpush.bf16.msra.mxu1 %v282_v5  ;;  %194 = vperm.xlu0 %291, %v96_v18   ;;  %v293_v20 = vld [vmem:[%s471_s4] ss:$0 sm:$0xff] }
  0x18   :  { %v95_v24 = vld [vmem:[%s472_s5] sm:$0x1] }
  0x1b   :  { %180 = vmatpush.bf16.msra.mxu1 %v281_v6 }
  0x1f   :  { %181 = vmatpush.bf16.msra.mxu1 %v280_v7 }
  0x23   :  { %182 = vmatpush.bf16.msra.mxu1 %v279_v8 }
  0x27   :  { %183 = vmatpush.bf16.msra.mxu1 %v278_v9 }
  0x2b   :  { %184 = vmatpush.bf16.msra.mxu1 %v277_v10 }
  0x2f   :  { %185 = vmatpush.bf16.msra.mxu1 %v276_v11 }
  0x89   :  { %v195_v26 = vpop.permute.xlu0 %194 }
  0x8a   :  { %v197_v27 = vperm.slane %v195_v26, 0 }
  0x92   :  { %v121_v13 = vpop.f32.mrf.mxu0 }
  0x93   :  { %v122_v14 = vadd.f32 %v292_v12, %v121_v13 }
  0x95   :  { %v125_v15 = vmax.f32 %v122_v14, 0.0 }
  0x97   :  { %v126_v16 = vpack.c.bf16 %v125_v15, %v125_v15 }
  0x99   :  { %186 = vmatmul.bf16.vlgmr.msra.gmra.mxu1 %v126_v16 }
  0x9a   :  { %v123_v17 = vpop.f32.mrf.mxu0 }
 0x116   :  { %v187_v21 = vpop.f32.mrf.mxu1 }
 0x117   :  { %v188_v22 = vadd.f32 %v293_v20, %v187_v21 }
 0x119   :  { %v191_v23 = vmax.f32 %v188_v22, 0.0 }
 0x11b   :  { %213 = vmatpush.xpose.msra.mxu2 %v191_v23 }
 0x11e   :  { %v189_v25 = vpop.f32.mrf.mxu1  ;;  %214 = vmatmul.f32.vlgmr.msra.gmra.mxu2 %v95_v24 }
 0x1a1   :  { %v215_v28 = vpop.f32.mrf.mxu2 }
 0x1a2   :  { %v216_v29 = vadd.f32 %v215_v28, %v197_v27 }
 0x1a4   :  { %219 = vst.msk [vmem:[#allocation9] sm:$0x1] %vm218_vm1, %v216_v29 }
 0x1a5   :  { %230 = dma.vmem_to_hbm [thread:$0]  %s226_s22, 16, %s228_s25, [#allocation5]  }
 0x1a6   :  { %394 = dma.done.wait [#allocation5], 16  }
 0x1a7   :  { %395 = vsyncadd [#allocation5], 4294967280 }
 0x1a8   :  { %235 = vsyncpa [#allocation4], 1 }
 0x1a9   :  { %236 = vsyncpa [#allocation7], 1 }
 0x1aa   :  { %237 = vsyncpa [#allocation5], 1 }

</bundles_post_ra>
